<compile_context>
chip_gen: v5e
topology: v5e:2x2
jax: 0.10.0
libtpu: 0.0.40
codegen_flags: <defaults>
</compile_context>

<pallas_src>
import functools

import jax
import jax.numpy as jnp
from jax import lax
from jax.experimental import pallas as pl
from jax.experimental.pallas import tpu as pltpu


def _round_up(x: int, m: int) -> int:
    return ((x + m - 1) // m) * m


def _logits_lse_t(contrast_ref, anchor_t_ref, *, n_valid, assume_normalized):
    """Transposed logits (N_pad, TM) and per-anchor LSE as a (1, TM) row."""
    n_pad = contrast_ref.shape[0]
    tm = anchor_t_ref.shape[1]
    # MXU: (N_pad, D) @ (D, TM) -> f32 (N_pad, TM).  Both operands arrive in
    # their natural MXU layouts; 1/temperature is already folded into anchor^T.
    logits_t = lax.dot_general(
        contrast_ref[...], anchor_t_ref[...],
        dimension_numbers=(((1,), (0,)), ((), ())),
        preferred_element_type=jnp.float32)

    a0 = pl.program_id(0) * tm
    anchor_idx = a0 + lax.broadcasted_iota(jnp.int32, (n_pad, tm), 1)
    contrast_idx = lax.broadcasted_iota(jnp.int32, (n_pad, tm), 0)
    # Drop the self entry (torch's logits_mask) and the zero-padded contrast
    # rows from the softmax denominator.
    keep = jnp.logical_and(contrast_idx != anchor_idx, contrast_idx < n_valid)
    masked = jnp.where(keep, logits_t, jnp.float32(-1e30))

    if assume_normalized:
        # |logit| <= 1/temperature for L2-normalized features: exp is safe.
        lse = jnp.log(jnp.sum(jnp.exp(masked), axis=0, keepdims=True))
    else:
        col_max = jnp.max(masked, axis=0, keepdims=True)
        lse = jnp.log(jnp.sum(jnp.exp(masked - col_max), axis=0,
                              keepdims=True)) + col_max
    return logits_t, lse, keep


def _store_mean_log_prob(out_ref, pos_logit, lse, pos_cnt):
    """All operands are lane-dense (1, TM) rows; the store is an unmasked vst."""
    pos_pairs = jnp.where(pos_cnt < 1e-6, jnp.float32(1.0), pos_cnt)
    out_ref[...] = (pos_logit - lse * pos_cnt) / pos_pairs


def _supcon_labels_kernel(contrast_ref, anchor_t_ref, contrast_lab_ref,
                          anchor_lab_ref, pos_cnt_ref, out_ref, *,
                          n_valid, assume_normalized):
    logits_t, lse, keep = _logits_lse_t(
        contrast_ref, anchor_t_ref, n_valid=n_valid,
        assume_normalized=assume_normalized)
    # Positives mask rebuilt in-kernel from labels (no (A, N) HBM mask stream).
    pos = jnp.logical_and(contrast_lab_ref[...] == anchor_lab_ref[...], keep)
    pos_logit = jnp.sum(jnp.where(pos, logits_t, 0.0), axis=0, keepdims=True)
    _store_mean_log_prob(out_ref, pos_logit, lse, pos_cnt_ref[...])


def _supcon_mask_kernel(contrast_ref, anchor_t_ref, mask_t_ref, pos_cnt_ref,
                        out_ref, *, n_valid, assume_normalized):
    logits_t, lse, _ = _logits_lse_t(
        contrast_ref, anchor_t_ref, n_valid=n_valid,
        assume_normalized=assume_normalized)
    # Explicit user mask (self column & padding already zeroed by the wrapper).
    m = mask_t_ref[...].astype(jnp.float32)
    pos_logit = jnp.sum(m * logits_t, axis=0, keepdims=True)
    _store_mean_log_prob(out_ref, pos_logit, lse, pos_cnt_ref[...])


def supcon_loss(features, labels=None, mask=None, *, temperature: float = 0.07,
                contrast_mode: str = "all", base_temperature: float = 0.07,
                matmul_dtype=jnp.bfloat16, block_rows: int = 256,
                assume_normalized: bool = False):
    """SupConLoss.forward: features [bsz, n_views, ...] -> scalar loss."""
    features = jnp.asarray(features)
    if features.ndim < 3:
        raise ValueError("`features` needs to be [bsz, n_views, ...], "
                         "at least 3 dimensions are required")
    if features.ndim > 3:
        features = features.reshape(features.shape[0], features.shape[1], -1)
    bsz, n_views, d = features.shape

    if labels is not None and mask is not None:
        raise ValueError("Cannot define both `labels` and `mask`")
    labels_vec = None
    if mask is None:
        if labels is None:
            labels_vec = jnp.arange(bsz, dtype=jnp.int32)      # SimCLR: eye mask
        else:
            labels_vec = jnp.asarray(labels).reshape(-1).astype(jnp.int32)
            if labels_vec.shape[0] != bsz:
                raise ValueError("Num of labels does not match num of features")
        small_mask = (labels_vec[:, None] == labels_vec[None, :]).astype(jnp.float32)
    else:
        small_mask = jnp.asarray(mask, dtype=jnp.float32)

    contrast_count = n_views
    # torch.cat(torch.unbind(features, dim=1), dim=0)
    contrast_feature = jnp.transpose(features, (1, 0, 2)).reshape(
        bsz * contrast_count, d)
    if contrast_mode == "one":
        anchor_feature = features[:, 0]
        anchor_count = 1
    elif contrast_mode == "all":
        anchor_feature = contrast_feature
        anchor_count = contrast_count
    else:
        raise ValueError(f"Unknown mode: {contrast_mode}")

    a_rows = bsz * anchor_count
    n_cols = bsz * contrast_count

    # ---- padded / tiled geometry (native (8,128) tiles, 128-wide lanes) -----
    d_pad = _round_up(d, 128)
    n_pad = _round_up(n_cols, 128)
    if a_rows <= max(int(block_rows), 8):
        tm = _round_up(a_rows, 8)                        # single anchor tile
    else:
        tm = max(128, (int(block_rows) // 128) * 128)    # multi-tile: 128-multiple
    a_pad = _round_up(a_rows, tm)
    num_tiles = a_pad // tm
    mmdt = jnp.dtype(matmul_dtype)

    # Anchor^T: fold 1/temperature, zero-pad, transpose to [K, N] MXU layout
    # and cast once in the wrapper (all fused by XLA, O(A*D)).
    anchor = anchor_feature.astype(jnp.float32) * (1.0 / float(temperature))
    anchor = jnp.pad(anchor, ((0, a_pad - a_rows), (0, d_pad - d)))
    anchor_t = anchor.T.astype(mmdt)                           # (d_pad, a_pad)

    # Contrast stays in its natural [M, K] layout, resident in VMEM.
    contrast = jnp.pad(contrast_feature.astype(jnp.float32),
                       ((0, n_pad - n_cols), (0, d_pad - d))).astype(mmdt)

    # Per-anchor positive count (self excluded) from the tiny (bsz, bsz) mask;
    # removes one (TM, N) cross-lane reduction per grid step.
    per_sample_cnt = (jnp.sum(small_mask, axis=1) * contrast_count
                      - jnp.diagonal(small_mask))
    pos_cnt = jnp.tile(per_sample_cnt, anchor_count)
    pos_cnt = jnp.pad(pos_cnt, (0, a_pad - a_rows)).reshape(1, a_pad)
    pos_cnt = pos_cnt.astype(jnp.float32)

    contrast_spec = pl.BlockSpec((n_pad, d_pad), lambda i: (0, 0))   # resident
    anchor_spec = pl.BlockSpec((d_pad, tm), lambda i: (0, i))
    cnt_spec = pl.BlockSpec((1, tm), lambda i: (0, i))
    out_spec = pl.BlockSpec((1, tm), lambda i: (0, i))               # lane-dense
    out_shape = jax.ShapeDtypeStruct((1, a_pad), jnp.float32)

    # VMEM budget: double-buffered inputs + the f32 (N_pad, TM) temporaries.
    est = (2 * n_pad * d_pad * mmdt.itemsize       # resident contrast
           + 2 * d_pad * tm * mmdt.itemsize        # anchor^T tile
           + 6 * n_pad * tm * 4                    # logits / keep / exp temporaries
           + 2 * n_pad * 4 + 8 * tm * 4)           # label vectors / counts / output

    if labels_vec is not None:
        # Positives mask implied by labels: ship only two tiny label vectors.
        contrast_lab = jnp.tile(labels_vec, contrast_count)
        contrast_lab = jnp.pad(contrast_lab, (0, n_pad - n_cols)).reshape(n_pad, 1)
        anchor_lab = jnp.tile(labels_vec, anchor_count)
        anchor_lab = jnp.pad(anchor_lab, (0, a_pad - a_rows)).reshape(1, a_pad)
        kernel = functools.partial(_supcon_labels_kernel, n_valid=n_cols,
                                   assume_normalized=bool(assume_normalized))
        in_specs = [contrast_spec, anchor_spec,
                    pl.BlockSpec((n_pad, 1), lambda i: (0, 0)),   # contrast labels
                    pl.BlockSpec((1, tm), lambda i: (0, i)),      # anchor labels
                    cnt_spec]
        args = (contrast, anchor_t, contrast_lab, anchor_lab, pos_cnt)
    else:
        # Explicit user mask: fall back to a tiled bf16 mask (exact for 0/1),
        # transposed to match the (N_pad, TM) logits orientation.
        big_mask = jnp.tile(small_mask, (anchor_count, contrast_count))
        not_self = (jnp.arange(a_rows)[:, None]
                    != jnp.arange(n_cols)[None, :]).astype(jnp.float32)
        mask_t = jnp.pad((big_mask * not_self).T,
                         ((0, n_pad - n_cols), (0, a_pad - a_rows)))
        mask_t = mask_t.astype(jnp.bfloat16)
        kernel = functools.partial(_supcon_mask_kernel, n_valid=n_cols,
                                   assume_normalized=bool(assume_normalized))
        in_specs = [contrast_spec, anchor_spec,
                    pl.BlockSpec((n_pad, tm), lambda i: (0, i)),  # mask^T tile
                    cnt_spec]
        args = (contrast, anchor_t, mask_t, pos_cnt)
        est += 2 * n_pad * tm * 2

    # Cap at 48 MiB so the same config also fits v7x's 64 MiB physical VMEM.
    vmem_limit = int(min(max(32 * 1024 * 1024, int(est * 1.25)),
                         48 * 1024 * 1024))

    per_row = pl.pallas_call(
        kernel,
        out_shape=out_shape,
        grid=(num_tiles,),
        in_specs=in_specs,
        out_specs=out_spec,
        compiler_params=pltpu.CompilerParams(
            dimension_semantics=("parallel",),   # anchor tiles are independent
            vmem_limit_bytes=vmem_limit,
        ),
    )(*args)

    mean_log_prob_pos = jnp.mean(per_row[0, :a_rows])
    return -(float(temperature) / float(base_temperature)) * mean_log_prob_pos


def _supcon_reference(features, labels=None, mask=None, temperature=0.07,
                      contrast_mode="all", base_temperature=0.07):
    """Pure-JAX mirror of the PyTorch SupConLoss.forward (f32 throughout)."""
    features = jnp.asarray(features, jnp.float32)
    if features.ndim > 3:
        features = features.reshape(features.shape[0], features.shape[1], -1)
    bsz = features.shape[0]
    if labels is None and mask is None:
        mask = jnp.eye(bsz, dtype=jnp.float32)
    elif labels is not None:
        labels = jnp.asarray(labels).reshape(-1, 1)
        mask = (labels == labels.T).astype(jnp.float32)
    else:
        mask = jnp.asarray(mask, jnp.float32)
    contrast_count = features.shape[1]
    contrast_feature = jnp.transpose(features, (1, 0, 2)).reshape(
        bsz * contrast_count, features.shape[2])
    if contrast_mode == "one":
        anchor_feature = features[:, 0]
        anchor_count = 1
    else:
        anchor_feature = contrast_feature
        anchor_count = contrast_count
    anchor_dot_contrast = jnp.matmul(anchor_feature, contrast_feature.T) / temperature
    logits_max = jnp.max(anchor_dot_contrast, axis=1, keepdims=True)
    logits = anchor_dot_contrast - logits_max
    mask = jnp.tile(mask, (anchor_count, contrast_count))
    a_rows = bsz * anchor_count
    n_cols = bsz * contrast_count
    logits_mask = 1.0 - (jnp.arange(a_rows)[:, None]
                         == jnp.arange(n_cols)[None, :]).astype(jnp.float32)
    mask = mask * logits_mask
    exp_logits = jnp.exp(logits) * logits_mask
    log_prob = logits - jnp.log(exp_logits.sum(axis=1, keepdims=True))
    mask_pos_pairs = mask.sum(axis=1)
    mask_pos_pairs = jnp.where(mask_pos_pairs < 1e-6, 1.0, mask_pos_pairs)
    mean_log_prob_pos = (mask * log_prob).sum(axis=1) / mask_pos_pairs
    loss = -(temperature / base_temperature) * mean_log_prob_pos
    return loss.reshape(anchor_count, bsz).mean()


if __name__ == "__main__":
    key = jax.random.PRNGKey(0)
    k1, k2 = jax.random.split(key)

    # SupCon is fed L2-normalized projection-head outputs.
    bsz, n_views, feat_dim = 8, 2, 32
    feats = jax.random.normal(k1, (bsz, n_views, feat_dim), dtype=jnp.float32)
    feats = feats / jnp.linalg.norm(feats, axis=-1, keepdims=True)
    labels = jnp.array([0, 1, 2, 3, 0, 1, 2, 3], dtype=jnp.int32)

    # 1) SimCLR (labels=None, mask=None), f32 MXU operands -> tight check.
    unsup = jax.block_until_ready(supcon_loss(feats, matmul_dtype=jnp.float32))
    unsup_ref = _supcon_reference(feats)
    assert jnp.isfinite(unsup), "loss is not finite"
    assert jnp.allclose(unsup, unsup_ref, rtol=1e-3, atol=1e-3), (unsup, unsup_ref)

    # 2) Supervised with labels (mask rebuilt in-kernel from labels), f32.
    sup = jax.block_until_ready(
        supcon_loss(feats, labels=labels, matmul_dtype=jnp.float32))
    sup_ref = _supcon_reference(feats, labels=labels)
    assert jnp.allclose(sup, sup_ref, rtol=1e-3, atol=1e-3), (sup, sup_ref)

    # 3) contrast_mode='one'.
    one = jax.block_until_ready(
        supcon_loss(feats, labels=labels, contrast_mode="one",
                    matmul_dtype=jnp.float32))
    one_ref = _supcon_reference(feats, labels=labels, contrast_mode="one")
    assert jnp.allclose(one, one_ref, rtol=1e-3, atol=1e-3), (one, one_ref)

    # 4) Explicit user mask (fallback path that ships a tiled mask).
    user_mask = (labels[:, None] == labels[None, :]).astype(jnp.float32)
    msk = jax.block_until_ready(
        supcon_loss(feats, mask=user_mask, matmul_dtype=jnp.float32))
    msk_ref = _supcon_reference(feats, mask=user_mask)
    assert jnp.allclose(msk, msk_ref, rtol=1e-3, atol=1e-3), (msk, msk_ref)

    # 5) assume_normalized fast path (skips the row-max reduce), f32.
    norm = jax.block_until_ready(
        supcon_loss(feats, labels=labels, matmul_dtype=jnp.float32,
                    assume_normalized=True))
    assert jnp.allclose(norm, sup_ref, rtol=1e-3, atol=1e-3), (norm, sup_ref)

    # 6) Default bf16 MXU operands: looser tolerance (bf16 feature rounding).
    sup_bf16 = jax.block_until_ready(supcon_loss(feats, labels=labels))
    assert jnp.isfinite(sup_bf16), "bf16-path loss is not finite"
    assert jnp.allclose(sup_bf16, sup_ref, rtol=5e-2, atol=2e-1), (sup_bf16, sup_ref)

    # 7) Multi-tile grid (a_rows > block_rows) exercising the per-tile
    #    program_id self-mask and the lane-dense multi-block output.
    bsz2 = 72
    feats2 = jax.random.normal(k2, (bsz2, 2, feat_dim), dtype=jnp.float32)
    feats2 = feats2 / jnp.linalg.norm(feats2, axis=-1, keepdims=True)
    labels2 = (jnp.arange(bsz2) % 6).astype(jnp.int32)
    big = jax.block_until_ready(
        supcon_loss(feats2, labels=labels2, matmul_dtype=jnp.float32,
                    block_rows=128))
    big_ref = _supcon_reference(feats2, labels=labels2)
    assert jnp.allclose(big, big_ref, rtol=1e-3, atol=1e-3), (big, big_ref)

    print("KERNEL_OK")
</pallas_src>

<mosaic_0001>
module attributes {stable_mosaic.version = 11 : i64} {
  func.func @_supcon_labels_kernel(%arg0: i32, %arg1: memref<128x128xf32, #tpu.memory_space<vmem>>, %arg2: memref<128x16xf32, #tpu.memory_space<vmem>>, %arg3: memref<128x1xi32, #tpu.memory_space<vmem>>, %arg4: memref<1x16xi32, #tpu.memory_space<vmem>>, %arg5: memref<1x16xf32, #tpu.memory_space<vmem>>, %arg6: memref<1x16xf32, #tpu.memory_space<vmem>>) attributes {dimension_semantics = [#tpu.dimension_semantics<parallel>], iteration_bounds = array<i64: 1>, scalar_prefetch = 0 : i64, scratch_operands = 0 : i64, tpu.core_type = #tpu.core_type<tc>, window_params = [{pipeline_mode = #tpu.pipeline_mode<synchronous>, transform_indices = @transform_0, window_bounds = array<i64: 128, 128>}, {transform_indices = @transform_1, window_bounds = array<i64: 128, 16>}, {pipeline_mode = #tpu.pipeline_mode<synchronous>, transform_indices = @transform_2, window_bounds = array<i64: 128, 1>}, {transform_indices = @transform_3, window_bounds = array<i64: 1, 16>}, {transform_indices = @transform_4, window_bounds = array<i64: 1, 16>}, {transform_indices = @transform_5, window_bounds = array<i64: 1, 16>}]} {
    %c0 = arith.constant 0 : index
    %c0_0 = arith.constant 0 : index
    %0 = vector.load %arg1[%c0, %c0_0] : memref<128x128xf32, #tpu.memory_space<vmem>>, vector<128x128xf32>
    %c0_1 = arith.constant 0 : index
    %c0_2 = arith.constant 0 : index
    %1 = vector.load %arg2[%c0_1, %c0_2] : memref<128x16xf32, #tpu.memory_space<vmem>>, vector<128x16xf32>
    %cst = arith.constant dense<0.000000e+00> : vector<128x16xf32>
    %2 = tpu.matmul %0, %1, %cst {dimension_numbers = #tpu.dot_dimension_numbers<[1], [0], [0], [1], [0, 0, 1, 1], [], []>} : vector<128x128xf32>, vector<128x16xf32>, vector<128x16xf32> -> vector<128x16xf32>
    %c16_i32 = arith.constant 16 : i32
    %3 = arith.muli %arg0, %c16_i32 : i32
    %4 = tpu.iota {dimensions = array<i32: 1>} : vector<128x16xi32>
    %5 = vector.broadcast %3 : i32 to vector<128x16xi32>
    %6 = arith.addi %5, %4 : vector<128x16xi32>
    %7 = tpu.iota {dimensions = array<i32: 0>} : vector<128x16xi32>
    %8 = arith.cmpi ne, %7, %6 : vector<128x16xi32>
    %c16_i32_3 = arith.constant 16 : i32
    %9 = vector.broadcast %c16_i32_3 : i32 to vector<128x16xi32>
    %10 = arith.cmpi slt, %7, %9 : vector<128x16xi32>
    %11 = arith.andi %8, %10 : vector<128x16xi1>
    %cst_4 = arith.constant -1.000000e+30 : f32
    %12 = vector.broadcast %cst_4 : f32 to vector<128x16xf32>
    %13 = arith.select %11, %2, %12 : vector<128x16xi1>, vector<128x16xf32>
    %cst_5 = arith.constant dense<0xFF800000> : vector<16xf32>
    %14 = vector.multi_reduction <maximumf>, %13, %cst_5 [0] : vector<128x16xf32> to vector<16xf32>
    %15 = vector.shape_cast %14 : vector<16xf32> to vector<1x16xf32>
    %16 = vector.broadcast %15 : vector<1x16xf32> to vector<128x16xf32>
    %17 = arith.subf %13, %16 : vector<128x16xf32>
    %18 = math.exp %17 : vector<128x16xf32>
    %cst_6 = arith.constant dense<0.000000e+00> : vector<16xf32>
    %19 = vector.multi_reduction <add>, %18, %cst_6 [0] : vector<128x16xf32> to vector<16xf32>
    %20 = vector.shape_cast %19 : vector<16xf32> to vector<1x16xf32>
    %21 = math.log %20 : vector<1x16xf32>
    %22 = arith.addf %21, %15 : vector<1x16xf32>
    %c0_7 = arith.constant 0 : index
    %c0_8 = arith.constant 0 : index
    %23 = vector.load %arg3[%c0_7, %c0_8] : memref<128x1xi32, #tpu.memory_space<vmem>>, vector<128x1xi32>
    %c0_9 = arith.constant 0 : index
    %c0_10 = arith.constant 0 : index
    %24 = vector.load %arg4[%c0_9, %c0_10] : memref<1x16xi32, #tpu.memory_space<vmem>>, vector<1x16xi32>
    %25 = vector.broadcast %23 : vector<128x1xi32> to vector<128x16xi32>
    %26 = vector.broadcast %24 : vector<1x16xi32> to vector<128x16xi32>
    %27 = arith.cmpi eq, %25, %26 : vector<128x16xi32>
    %28 = arith.andi %27, %11 : vector<128x16xi1>
    %cst_11 = arith.constant 0.000000e+00 : f32
    %29 = vector.broadcast %cst_11 : f32 to vector<128x16xf32>
    %30 = arith.select %28, %2, %29 : vector<128x16xi1>, vector<128x16xf32>
    %cst_12 = arith.constant dense<0.000000e+00> : vector<16xf32>
    %31 = vector.multi_reduction <add>, %30, %cst_12 [0] : vector<128x16xf32> to vector<16xf32>
    %32 = vector.shape_cast %31 : vector<16xf32> to vector<1x16xf32>
    %c0_13 = arith.constant 0 : index
    %c0_14 = arith.constant 0 : index
    %33 = vector.load %arg5[%c0_13, %c0_14] : memref<1x16xf32, #tpu.memory_space<vmem>>, vector<1x16xf32>
    %cst_15 = arith.constant 9.99999997E-7 : f32
    %34 = vector.broadcast %cst_15 : f32 to vector<1x16xf32>
    %35 = arith.cmpf olt, %33, %34 : vector<1x16xf32>
    %cst_16 = arith.constant 1.000000e+00 : f32
    %36 = vector.broadcast %cst_16 : f32 to vector<1x16xf32>
    %37 = arith.select %35, %36, %33 : vector<1x16xi1>, vector<1x16xf32>
    %38 = arith.mulf %22, %33 : vector<1x16xf32>
    %39 = arith.subf %32, %38 : vector<1x16xf32>
    %40 = arith.divf %39, %37 : vector<1x16xf32>
    %c0_17 = arith.constant 0 : index
    %c0_18 = arith.constant 0 : index
    %41 = vector.load %arg6[%c0_17, %c0_18] : memref<1x16xf32, #tpu.memory_space<vmem>>, vector<1x16xf32>
    tpu.vector_store %arg6[%c0_17, %c0_18], %40 {strides = array<i32>} : memref<1x16xf32, #tpu.memory_space<vmem>>, vector<1x16xf32>,
    return
  }
  func.func @transform_0(%arg0: i32) -> (i32, i32) {
    %c0_i32 = arith.constant 0 : i32
    %c0_i32_0 = arith.constant 0 : i32
    %c0_i32_1 = arith.constant 0 : i32
    return %c0_i32, %c0_i32_0 : i32, i32
  }
  func.func @transform_1(%arg0: i32) -> (i32, i32) {
    %c0_i32 = arith.constant 0 : i32
    %c0_i32_0 = arith.constant 0 : i32
    return %c0_i32, %arg0 : i32, i32
  }
  func.func @transform_2(%arg0: i32) -> (i32, i32) {
    %c0_i32 = arith.constant 0 : i32
    %c0_i32_0 = arith.constant 0 : i32
    %c0_i32_1 = arith.constant 0 : i32
    return %c0_i32, %c0_i32_0 : i32, i32
  }
  func.func @transform_3(%arg0: i32) -> (i32, i32) {
    %c0_i32 = arith.constant 0 : i32
    %c0_i32_0 = arith.constant 0 : i32
    return %c0_i32, %arg0 : i32, i32
  }
  func.func @transform_4(%arg0: i32) -> (i32, i32) {
    %c0_i32 = arith.constant 0 : i32
    %c0_i32_0 = arith.constant 0 : i32
    return %c0_i32, %arg0 : i32, i32
  }
  func.func @transform_5(%arg0: i32) -> (i32, i32) {
    %c0_i32 = arith.constant 0 : i32
    %c0_i32_0 = arith.constant 0 : i32
    return %c0_i32, %arg0 : i32, i32
  }
}

</mosaic_0001>

<bundles_post_ra>
// kernel: tpu_custom_call.1
= control target key start
LH: loop header
LB: loop body
LE: loop exit
PB: predicated region body
PF: predicated region fallthrough
CT: control target
= control target key end

     0   :  { %v608_v2 = vmov 0   ;;  %s776_s0 = inlined_call_operand.vmem [shape: f32[128,128], index: 0, kind: input, shape index: {}]   ;;  %s777_s1 = inlined_call_operand.vmem [shape: f32[128,16], index: 1, kind: input, shape index: {}]   ;;  %s778_s2 = inlined_call_operand.vmem [shape: s32[128,1], index: 2, kind: input, shape index: {}]   ;;  %s779_s3 = inlined_call_operand.vmem [shape: s32[1,16], index: 3, kind: input, shape index: {}]   ;;  %s780_s4 = inlined_call_operand.vmem [shape: f32[1,16], index: 4, kind: input, shape index: {}]   ;;  %s781_s5 = inlined_call_operand.hbm [shape: f32[1,16], index: 5, kind: output, shape index: {}]  }
   0x1   :  { %v52_v0 = vld [vmem:[%s777_s1 + $0x78] sm:$0xff]  ;;  %v51_v1 = vld [vmem:[%s777_s1 + $0x70] sm:$0xff]  ;;  %570 = vset.pattern.permute.xlu0 %v608_v2  ;;  %v50_v3 = vld [vmem:[%s777_s1 + $0x68] sm:$0xff] }
   0x2   :  { %53 = vmatpush.msra.mxu0 %v52_v0  ;;  %520 = vmatpush.msra.mxu2 %v52_v0  ;;  %v49_v4 = vld [vmem:[%s777_s1 + $0x60] sm:$0xff]  ;;  %v48_v5 = vld [vmem:[%s777_s1 + $0x58] sm:$0xff] }
   0x3   :  { %521 = vmatpush.msra.mxu3 %v52_v0  ;;  %519 = vmatpush.msra.mxu1 %v52_v0 }
   0x4   :  { %54 = vmatpush.msra.mxu0 %v51_v1  ;;  %523 = vmatpush.msra.mxu2 %v51_v1 }
   0x5   :  { %524 = vmatpush.msra.mxu3 %v51_v1  ;;  %522 = vmatpush.msra.mxu1 %v51_v1 }
   0x6   :  { %55 = vmatpush.msra.mxu0 %v50_v3  ;;  %526 = vmatpush.msra.mxu2 %v50_v3 }
   0x7   :  { %527 = vmatpush.msra.mxu3 %v50_v3 }
   0x8   :  { %10 = vsyncpa [#allocation3], 0  ;;  %56 = vmatpush.msra.mxu0 %v49_v4  ;;  %525 = vmatpush.msra.mxu1 %v50_v3  ;;  %v47_v6 = vld [vmem:[%s777_s1 + $0x50] sm:$0xff]  ;;  %v330_v7 = vld [vmem:[%s778_s2] sm:$0xff]  ;;  %v119_v35 = vlaneseq  ;;  %vm204_vm3 = vcmask 130048   ;;  %v609_v47 = vmov -inf  }
   0x9   :  { %529 = vmatpush.msra.mxu2 %v49_v4  ;;  %530 = vmatpush.msra.mxu3 %v49_v4  ;;  %v46_v8 = vld [vmem:[%s777_s1 + $0x48] sm:$0xff]  ;;  %v45_v9 = vld [vmem:[%s777_s1 + $0x40] sm:$0xff]  ;;  %v44_v10 = vld [vmem:[%s777_s1 + $0x38] sm:$0xff]  ;;  %v207_v48 = vsel %vm204_vm3, -1e+30, %v609_v47  ;;  %s510_s12 = sshll.u32 %s781_s5, 4  ;;  %s511_s12 = int_to_ptr.hbm [resolvable:$true] %s510_s12 }
   0xa   :  { %57 = vmatpush.msra.mxu0 %v48_v5  ;;  %348 = vperm.xlu0 %570, %v330_v7   ;;  %v331_v11 = vld [vmem:[%s778_s2 + $0x8] sm:$0xff]  ;;  %v43_v12 = vld [vmem:[%s777_s1 + $0x30] sm:$0xff]  ;;  %v41_v14 = vld [vmem:[%s777_s1 + $0x20] sm:$0xff]  ;;  %v120_v38 = vand.u32 127, %v119_v35  ;;  %v124_v39 = vshrl.u32 %v119_v35, 7  ;;  %vm501_vm12 = vcmask 122880  }
   0xb   :  { %532 = vmatpush.msra.mxu2 %v48_v5  ;;  %533 = vmatpush.msra.mxu3 %v48_v5  ;;  %v42_v13 = vld [vmem:[%s777_s1 + $0x28] sm:$0xff]  ;;  %v40_v15 = vld [vmem:[%s777_s1 + $0x18] sm:$0xff]  ;;  %v39_v16 = vld [vmem:[%s777_s1 + $0x10] sm:$0xff] }
   0xc   :  { %58 = vmatpush.msra.mxu0 %v47_v6  ;;  %528 = vmatpush.msra.mxu1 %v49_v4  ;;  %v38_v17 = vld [vmem:[%s777_s1 + $0x8] sm:$0xff]  ;;  %v37_v18 = vld [vmem:[%s777_s1] sm:$0xff]  ;;  %v23_v27 = vld [vmem:[%s776_s0 + $0x10] sm:$0xff]  ;;  %vm140_vm0 = vcmp.ne.s32.totalorder %v124_v39, %v120_v38  ;;  %v125_v41 = vadd.s32 8, %v124_v39 }
   0xd   :  { %535 = vmatpush.msra.mxu2 %v47_v6  ;;  %536 = vmatpush.msra.mxu3 %v47_v6  ;;  %v21_v19 = vld [vmem:[%s776_s0] sm:$0xff]  ;;  %v22_v23 = vld [vmem:[%s776_s0 + $0x8] sm:$0xff]  ;;  %v31_v28 = vld [vmem:[%s776_s0 + $0x50] sm:$0xff] }
   0xe   :  { %59 = vmatpush.msra.mxu0 %v46_v8  ;;  %531 = vmatpush.msra.mxu1 %v48_v5  ;;  %v29_v20 = vld [vmem:[%s776_s0 + $0x40] sm:$0xff]  ;;  %v30_v24 = vld [vmem:[%s776_s0 + $0x48] sm:$0xff]  ;;  %v35_v29 = vld [vmem:[%s776_s0 + $0x70] sm:$0xff]  ;;  %vm141_vm4 = vcmp.ne.s32.totalorder %v125_v41, %v120_v38 }
   0xf   :  { %538 = vmatpush.msra.mxu2 %v46_v8  ;;  %539 = vmatpush.msra.mxu3 %v46_v8  ;;  %v33_v21 = vld [vmem:[%s776_s0 + $0x60] sm:$0xff]  ;;  %v34_v25 = vld [vmem:[%s776_s0 + $0x68] sm:$0xff]  ;;  %v27_v30 = vld [vmem:[%s776_s0 + $0x30] sm:$0xff] }
  0x10   :  { %60 = vmatpush.msra.mxu0 %v45_v9  ;;  %534 = vmatpush.msra.mxu1 %v47_v6  ;;  %v25_v22 = vld [vmem:[%s776_s0 + $0x20] sm:$0xff]  ;;  %v26_v26 = vld [vmem:[%s776_s0 + $0x28] sm:$0xff]  ;;  %v24_v31 = vld [vmem:[%s776_s0 + $0x18] sm:$0xff] }
  0x11   :  { %541 = vmatpush.msra.mxu2 %v45_v9  ;;  %542 = vmatpush.msra.mxu3 %v45_v9  ;;  %v32_v32 = vld [vmem:[%s776_s0 + $0x58] sm:$0xff]  ;;  %v571_v37 = vld [vmem:[%s779_s3] ss:$0 sm:$0xff] }
  0x12   :  { %61 = vmatpush.msra.mxu0 %v44_v10  ;;  %351 = vperm.xlu0 %570, %v331_v11   ;;  %v36_v33 = vld [vmem:[%s776_s0 + $0x78] sm:$0xff]  ;;  %v481_v41 = vld [vmem:[%s780_s4] sm:$0x1]  ;;  %s610_s4 = smov [#allocation2]  }
  0x13   :  { %544 = vmatpush.msra.mxu2 %v44_v10  ;;  %545 = vmatpush.msra.mxu3 %v44_v10  ;;  %v28_v34 = vld [vmem:[%s776_s0 + $0x38] sm:$0xff]  ;;  %vm482_vm7 = vcmp.lt.f32.partialorder %v481_v41, 1e-06  ;;  %s508_s9 = sshll.u32 %s610_s4, 4  ;;  %s509_s9 = int_to_ptr.vmem [resolvable:$true] %s508_s9 }
  0x14   :  { %62 = vmatpush.msra.mxu0 %v43_v12  ;;  %537 = vmatpush.msra.mxu1 %v46_v8 }
  0x15   :  { %547 = vmatpush.msra.mxu2 %v43_v12  ;;  %548 = vmatpush.msra.mxu3 %v43_v12 }
  0x16   :  { %63 = vmatpush.msra.mxu0 %v42_v13  ;;  %540 = vmatpush.msra.mxu1 %v45_v9 }
  0x17   :  { %550 = vmatpush.msra.mxu2 %v42_v13  ;;  %551 = vmatpush.msra.mxu3 %v42_v13 }
  0x18   :  { %64 = vmatpush.msra.mxu0 %v41_v14  ;;  %543 = vmatpush.msra.mxu1 %v44_v10 }
  0x19   :  { %553 = vmatpush.msra.mxu2 %v41_v14  ;;  %554 = vmatpush.msra.mxu3 %v41_v14 }
  0x1a   :  { %65 = vmatpush.msra.mxu0 %v40_v15  ;;  %546 = vmatpush.msra.mxu1 %v43_v12 }
  0x1b   :  { %556 = vmatpush.msra.mxu2 %v40_v15  ;;  %557 = vmatpush.msra.mxu3 %v40_v15 }
  0x1c   :  { %66 = vmatpush.msra.mxu0 %v39_v16  ;;  %549 = vmatpush.msra.mxu1 %v42_v13 }
  0x1d   :  { %559 = vmatpush.msra.mxu2 %v39_v16  ;;  %560 = vmatpush.msra.mxu3 %v39_v16 }
  0x1e   :  { %67 = vmatpush.msra.mxu0 %v38_v17  ;;  %552 = vmatpush.msra.mxu1 %v41_v14 }
  0x1f   :  { %562 = vmatpush.msra.mxu2 %v38_v17  ;;  %563 = vmatpush.msra.mxu3 %v38_v17 }
  0x20   :  { %68 = vmatpush.msra.mxu0 %v37_v18  ;;  %555 = vmatpush.msra.mxu1 %v40_v15 }
  0x21   :  { %69 = vmatmul.f32.vlgmr.msra.gmra.mxu0 %v21_v19  ;;  %565 = vmatpush.msra.mxu2 %v37_v18 }
  0x22   :  { %566 = vmatpush.msra.mxu3 %v37_v18  ;;  %93 = vmatmul.f32.vlgmr.msra.gmra.mxu2 %v29_v20 }
  0x23   :  { %105 = vmatmul.f32.vlgmr.msra.gmra.mxu3 %v33_v21  ;;  %558 = vmatpush.msra.mxu1 %v39_v16 }
  0x25   :  { %561 = vmatpush.msra.mxu1 %v38_v17 }
  0x27   :  { %564 = vmatpush.msra.mxu1 %v37_v18 }
  0x28   :  { %81 = vmatmul.f32.vlgmr.msra.gmra.mxu1 %v25_v22 }
  0x29   :  { %72 = vmatmul.f32.gmra.mxu0 %v22_v23 }
  0x2a   :  { %96 = vmatmul.f32.gmra.mxu2 %v30_v24 }
  0x2b   :  { %108 = vmatmul.f32.gmra.mxu3 %v34_v25 }
  0x30   :  { %84 = vmatmul.f32.gmra.mxu1 %v26_v26 }
  0x31   :  { %75 = vmatmul.f32.gmra.mxu0 %v23_v27 }
  0x32   :  { %99 = vmatmul.f32.gmra.mxu2 %v31_v28 }
  0x33   :  { %111 = vmatmul.f32.gmra.mxu3 %v35_v29 }
  0x38   :  { %87 = vmatmul.f32.gmra.mxu1 %v27_v30 }
  0x39   :  { %78 = vmatmul.f32.gmra.mxu0 %v24_v31 }
  0x3a   :  { %102 = vmatmul.f32.gmra.mxu2 %v32_v32 }
  0x3b   :  { %114 = vmatmul.f32.gmra.mxu3 %v36_v33 }
  0x40   :  { %90 = vmatmul.f32.gmra.mxu1 %v28_v34 }
  0x7c   :  { %v349_v36 = vpop.permute.xlu0 %348 }
  0x7d   :  { %vm396_vm1 = vcmp.eq.s32.totalorder %v349_v36, %v571_v37 }
  0x7e   :  { %vm746_vm2 = vmand %vm396_vm1, %vm140_vm0 }
  0x84   :  { %v352_v43 = vpop.permute.xlu0 %351 }
  0x85   :  { %vm397_vm5 = vcmp.eq.s32.totalorder %v352_v43, %v571_v37 }
  0x86   :  { %vm413_vm6 = vmand %vm397_vm5, %vm141_vm4 }
  0x9e   :  { %v70_v42 = vpop.f32.mrf.mxu0 }
  0x9f   :  { %v188_v44 = vsel %vm140_vm0, %v70_v42, -1e+30  ;;  %v428_v45 = vsel %vm746_vm2, %v70_v42, 0.0 }
  0xa0   :  { %v205_v46 = vsel %vm204_vm3, %v188_v44, -inf  ;;  %v444_v56 = vsel %vm204_vm3, %v428_v45, 0.0  ;;  %v483_v45 = vsel %vm482_vm7, 1.0, %v481_v41 }
  0xa1   :  { %v210_v49 = vmax.f32 %v205_v46, %v207_v48  ;;  %vm491_vm8 = vweird.f32 %v483_v45 }
  0xa3   :  { %v218_v59 = vmax.f32 %v210_v49, %v207_v48 }
  0xa5   :  { %v82_v50 = vpop.f32.mrf.mxu1  ;;  %v94_v51 = vpop.f32.mrf.mxu2  ;;  %v226_v63 = vmax.f32 %v218_v59, %v207_v48 }
  0xa6   :  { %v73_v52 = vpop.f32.mrf.mxu0  ;;  %v106_v53 = vpop.f32.mrf.mxu3 }
  0xa7   :  { %v189_v54 = vsel %vm141_vm4, %v73_v52, -1e+30  ;;  %v429_v55 = vsel %vm413_vm6, %v73_v52, 0.0 }
  0xa8   :  { %v206_v57 = vsel %vm204_vm3, %v189_v54, -inf  ;;  %v445_v58 = vsel %vm204_vm3, %v429_v55, 0.0 }
  0xa9   :  { %v212_v60 = vmax.f32 %v206_v57, %v207_v48  ;;  %v757_v61 = vadd.f32 %v445_v58, %v444_v56 }
  0xab   :  { %v220_v62 = vmax.f32 %v212_v60, %v207_v48  ;;  %v475_v52 = vrot.slane %v757_v61, 4 }
  0xad   :  { %v228_v0 = vmax.f32 %v220_v62, %v207_v48  ;;  %v85_v1 = vpop.f32.mrf.mxu1  ;;  %v97_v2 = vpop.f32.mrf.mxu2  ;;  %v476_v56 = vadd.f32 %v475_v52, %v757_v61 }
  0xae   :  { %v109_v3 = vpop.f32.mrf.mxu3  ;;  %v76_v4 = vpop.f32.mrf.mxu0  ;;  %v495_v2 = vand.u32 2147483647, %v483_v45 }
  0xaf   :  { %v233_v5 = vmax.f32 %v226_v63, %v228_v0  ;;  %v477_v60 = vrot.slane %v476_v56, 2  ;;  %v497_v0 = vand.u32 2147483648, %v483_v45 }
  0xb0   :  { %vm496_vm11 = vcmp.eq.f32.partialorder %v495_v2, 8.507059e+37 }
  0xb1   :  { %v235_v6 = vmax.f32 %v233_v5, %v207_v48  ;;  %v478_v63 = vadd.f32 %v477_v60, %v476_v56 }
  0xb3   :  { %v236_v7 = vrot.slane %v235_v6, 4  ;;  %v479_v4 = vrot.slane %v478_v63, 1 }
  0xb5   :  { %v237_v8 = vmax.f32 %v235_v6, %v236_v7  ;;  %v88_v9 = vpop.f32.mrf.mxu1  ;;  %v100_v10 = vpop.f32.mrf.mxu2  ;;  %v498_v6 = vor.u32 1.1754944e-38, %v497_v0 }
  0xb6   :  { %v112_v11 = vpop.f32.mrf.mxu3  ;;  %v79_v12 = vpop.f32.mrf.mxu0 }
  0xb7   :  { %v238_v13 = vrot.slane %v237_v8, 2 }
  0xb9   :  { %v239_v14 = vmax.f32 %v237_v8, %v238_v13  ;;  %v480_v8 = vadd.f32 %v479_v4, %v478_v63 }
  0xbb   :  { %v240_v15 = vrot.slane %v239_v14, 1 }
  0xbd   :  { %v759_v16 = vmax.f32 %v239_v14, %v240_v15  ;;  %v91_v17 = vpop.f32.mrf.mxu1  ;;  %v103_v18 = vpop.f32.mrf.mxu2 }
  0xbe   :  { %v115_v19 = vpop.f32.mrf.mxu3 }
  0xbf   :  { %v242_v20 = vsub.f32 %v188_v44, %v759_v16  ;;  %v243_v21 = vsub.f32 %v189_v54, %v759_v16  ;;  %v244_v22 = vsub.f32 -1e+30, %v759_v16 }
  0xc1   :  { %v258_v23 = vmul.f32 1.442695, %v242_v20  ;;  %v260_v24 = vmul.f32 1.442695, %v243_v21  ;;  %v262_v25 = vmul.f32 1.442695, %v244_v22 }
  0xc3   :  { %572 = vpow2.f32 %v258_v23 }
  0xc4   :  { %574 = vpow2.f32 %v260_v24 }
  0xc5   :  { %576 = vpow2.f32 %v262_v25 }
  0xc6   :  { %578 = vrcp.f32 %v483_v45 }
  0xc9   :  { %v573_v26 = vpop.eup %572 }
  0xca   :  { %v575_v27 = vpop.eup %574  ;;  %v290_v28 = vsel %vm204_vm3, %v573_v26, 0.0 }
  0xcb   :  { %v577_v29 = vpop.eup %576  ;;  %v291_v30 = vsel %vm204_vm3, %v575_v27, 0.0 }
  0xcc   :  { %v292_v31 = vadd.f32 %v291_v30, %v290_v28  ;;  %v293_v32 = vsel %vm204_vm3, %v577_v29, 0.0  ;;  %v579_v50 = vpop.eup %578 }
  0xcd   :  { %v487_v54 = vmul.f32 %v579_v50, %v483_v45  ;;  %vm492_vm9 = vweird.f32 %v579_v50 }
  0xce   :  { %v294_v33 = vadd.f32 %v293_v32, %v292_v31  ;;  %vm493_vm10 = vmor %vm491_vm8, %vm492_vm9 }
  0xcf   :  { %v488_v58 = vsub.f32 1.0, %v487_v54 }
  0xd0   :  { %v296_v34 = vadd.f32 %v294_v33, %v293_v32 }
  0xd1   :  { %v489_v62 = vmul.f32 %v579_v50, %v488_v58 }
  0xd2   :  { %v298_v35 = vadd.f32 %v296_v34, %v293_v32 }
  0xd3   :  { %v490_v1 = vadd.f32 %v579_v50, %v489_v62 }
  0xd4   :  { %v300_v36 = vadd.f32 %v298_v35, %v293_v32 }
  0xd5   :  { %v494_v61 = vsel %vm493_vm10, %v579_v50, %v490_v1 }
  0xd6   :  { %v302_v37 = vadd.f32 %v300_v36, %v293_v32  ;;  %v499_v10 = vsel %vm496_vm11, %v498_v6, %v494_v61 }
  0xd8   :  { %v304_v38 = vadd.f32 %v302_v37, %v293_v32 }
  0xda   :  { %v306_v39 = vadd.f32 %v304_v38, %v293_v32 }
  0xdc   :  { %v308_v40 = vadd.f32 %v306_v39, %v293_v32 }
  0xde   :  { %v310_v42 = vadd.f32 %v308_v40, %v293_v32 }
  0xe0   :  { %v312_v43 = vadd.f32 %v310_v42, %v293_v32 }
  0xe2   :  { %v314_v44 = vadd.f32 %v312_v43, %v293_v32 }
  0xe4   :  { %v316_v46 = vadd.f32 %v314_v44, %v293_v32 }
  0xe6   :  { %v318_v47 = vadd.f32 %v316_v46, %v293_v32 }
  0xe8   :  { %v320_v48 = vadd.f32 %v318_v47, %v293_v32 }
  0xea   :  { %v321_v49 = vrot.slane %v320_v48, 4 }
  0xec   :  { %v322_v51 = vadd.f32 %v321_v49, %v320_v48 }
  0xee   :  { %v323_v53 = vrot.slane %v322_v51, 2 }
  0xf0   :  { %v324_v55 = vadd.f32 %v323_v53, %v322_v51 }
  0xf2   :  { %v325_v57 = vrot.slane %v324_v55, 1 }
  0xf4   :  { %v326_v59 = vadd.f32 %v325_v57, %v324_v55 }
  0xf6   :  { %580 = vlog2.f32 %v326_v59 }
  0xfc   :  { %v581_v3 = vpop.eup %580 }
  0xfd   :  { %v328_v5 = vmul.f32 0.6931472, %v581_v3 }
  0xff   :  { %v329_v7 = vadd.f32 %v328_v5, %v759_v16 }
 0x101   :  { %v484_v9 = vmul.f32 %v481_v41, %v329_v7 }
 0x103   :  { %v485_v11 = vsub.f32 %v480_v8, %v484_v9 }
 0x105   :  { %v500_v12 = vmul.f32 %v499_v10, %v485_v11 }
 0x107   :  { %502 = vst.msk [vmem:[#allocation2] sm:$0x1] %vm501_vm12, %v500_v12 }
 0x108   :  { %513 = dma.vmem_to_hbm [thread:$0]  %s509_s9, 16, %s511_s12, [#allocation3]  }
 0x109   :  { %606 = dma.done.wait [#allocation3], 16  }
 0x10a   :  { %607 = vsyncadd [#allocation3], 4294967280 }
 0x10b   :  { %518 = vsyncpa [#allocation3], 1 }

</bundles_post_ra>
